<compile_context>
chip_gen: v6e
topology: v6e:2x2x1
jax: 0.10.0
libtpu: 0.0.40
codegen_flags: <defaults>
</compile_context>

<pallas_src>
import jax
import jax.numpy as jnp
from jax.experimental import pallas as pl
from jax.experimental.pallas import tpu as pltpu


_HI = jax.lax.Precision.HIGHEST  # used only by the pure-JAX reference


def _coordatt_kernel(x_ref, p_ref, eh_ref, ew_ref,
                     w1_ref, s1_ref, wh_ref, bh_ref, ww_ref, bw_ref,
                     out_ref):
    nb, c, hw = x_ref.shape
    hp = eh_ref.shape[0]          # padded H-strip width (multiple of 128)
    nbc = nb * c

    # Flatten the image block to a single lane-dense 2-D matrix.  nb > 1 is only
    # selected by the wrapper when C % 8 == 0 (layout-preserving reshape).
    if nb == 1:
        x_flat = x_ref[0]                                   # (C, HW)
    else:
        x_flat = x_ref[...].reshape(nbc, hw)                # (nb*C, HW)

    # --- fused coordinate pooling: one bf16 MXU matmul (mean factors folded) ---
    pooled = jnp.dot(x_flat.astype(jnp.bfloat16), p_ref[...],
                     preferred_element_type=jnp.float32)    # (nbc, Sp)

    # --- conv1 (+ folded bias / eval-BN) and h_swish over the padded strip ---
    y = jnp.dot(w1_ref[...], pooled,
                preferred_element_type=jnp.float32) + s1_ref[...]   # (nb*mip, Sp)
    y = y * (jnp.clip(y + 3.0, 0.0, 6.0) * (1.0 / 6.0))             # h_swish

    # --- per-direction 1x1 convs + sigmoid gates (lane-aligned strip slices) ---
    a_h = jax.nn.sigmoid(
        jnp.dot(wh_ref[...], y[:, :hp], preferred_element_type=jnp.float32)
        + bh_ref[...])                                      # (nbc, Hp)
    a_w = jax.nn.sigmoid(
        jnp.dot(ww_ref[...], y[:, hp:], preferred_element_type=jnp.float32)
        + bw_ref[...])                                      # (nbc, Wp)

    # --- expand gates back to the flat lane-dense layout (one-hot bf16 matmuls;
    #     the zero rows of Eh/Ew drop the padded strip columns exactly) ---
    g_h = jnp.dot(a_h.astype(jnp.bfloat16), eh_ref[...],
                  preferred_element_type=jnp.float32)       # (nbc, hw)
    g_w = jnp.dot(a_w.astype(jnp.bfloat16), ew_ref[...],
                  preferred_element_type=jnp.float32)       # (nbc, hw)

    # --- final gating: identity * a_h * a_w, fully lane-dense store ---
    gate = g_h * g_w
    if nb == 1:
        out_ref[0] = (x_ref[0] * gate).astype(out_ref.dtype)
    else:
        out_ref[...] = (x_ref[...] * gate.reshape(nb, c, hw)).astype(out_ref.dtype)


def _round_up(v, m):
    return ((v + m - 1) // m) * m


def _cdiv(a, b):
    return -(-a // b)


def coord_att(x, params, *, images_per_step=None):
    """CoordAtt forward.  x: (N, C, H, W) NCHW.  params: see init_params()."""
    w1, b1, bn_scale, bn_shift, wh, bh, ww, bw = params
    n, c, h, w = x.shape
    hw = h * w
    mip = w1.shape[0]
    itemsize = x.dtype.itemsize

    # --- fold conv1 bias + eval-mode BatchNorm into a single affine ---
    w1_eff = (bn_scale * w1).astype(jnp.float32)              # (mip, C)
    s1_eff = (bn_scale * b1 + bn_shift).astype(jnp.float32)   # (mip, 1)

    # --- packed pooling matrix + one-hot expansion matrices (bf16, lane-padded) ---
    hp = _round_up(h, 128)
    wp = _round_up(w, 128)
    sp = hp + wp
    k = jnp.arange(hw)
    row = k // w                  # h index of flat position
    col = k % w                   # w index of flat position
    p_mat = jnp.zeros((hw, sp), jnp.float32)
    p_mat = p_mat.at[:, :h].set(
        (row[:, None] == jnp.arange(h)[None, :]).astype(jnp.float32) / w)
    p_mat = p_mat.at[:, hp:hp + w].set(
        (col[:, None] == jnp.arange(w)[None, :]).astype(jnp.float32) / h)
    p_mat = p_mat.astype(jnp.bfloat16)                        # (HW, Sp)
    eh = jnp.zeros((hp, hw), jnp.float32).at[:h, :].set(
        (jnp.arange(h)[:, None] == row[None, :]).astype(jnp.float32)
    ).astype(jnp.bfloat16)                                    # (Hp, HW)
    ew = jnp.zeros((wp, hw), jnp.float32).at[:w, :].set(
        (jnp.arange(w)[:, None] == col[None, :]).astype(jnp.float32)
    ).astype(jnp.bfloat16)                                    # (Wp, HW)

    const_bytes = 2 * (hw * sp + hp * hw + wp * hw)           # bf16 matrices

    def weight_bytes(nb):
        nbc, nbm = nb * c, nb * mip
        return 4 * (3 * nbc * nbm + nbm + 2 * nbc)

    def vmem_estimate(nb):
        nbc, nbm = nb * c, nb * mip
        block = nb * c * hw * itemsize
        # pooled + y + a_h/a_w + (g_h, g_w, gate) f32 temps + bf16 x copy
        temps = 4 * (nbc * sp + nbm * sp + nbc * (hp + wp) + 3 * nbc * hw) \
            + 2 * nbc * hw
        # in/out blocks and constants are double-buffered by the pipeline.
        return 4 * block + 2 * (const_bytes + weight_bytes(nb)) + temps + (2 << 20)

    # --- images per grid step: fill the VMEM budget but keep >= 2 grid steps ---
    if images_per_step is None:
        nb = 1
        while nb < n:
            cand = nb + 1
            if c % 8 != 0:                      # in-kernel (nb*C, HW) reshape needs C%8==0
                break
            if vmem_estimate(cand) > (36 << 20):
                break
            if n >= 2 and _cdiv(n, cand) < 2:   # keep >=2 grid steps (megacore)
                break
            nb = cand
    else:
        nb = int(images_per_step)
        assert nb == 1 or c % 8 == 0, "images_per_step > 1 requires C % 8 == 0"
    grid_len = _cdiv(n, nb)
    n_pad = grid_len * nb

    # --- block-diagonal weights: the whole block becomes one 2-D problem ---
    eye_nb = jnp.eye(nb, dtype=jnp.float32)
    w1_blk = jnp.kron(eye_nb, w1_eff)                         # (nb*mip, nb*C)
    wh_blk = jnp.kron(eye_nb, wh.astype(jnp.float32))         # (nb*C, nb*mip)
    ww_blk = jnp.kron(eye_nb, ww.astype(jnp.float32))         # (nb*C, nb*mip)
    s1_t = jnp.tile(s1_eff, (nb, 1))                          # (nb*mip, 1)
    bh_t = jnp.tile(bh.astype(jnp.float32), (nb, 1))          # (nb*C, 1)
    bw_t = jnp.tile(bw.astype(jnp.float32), (nb, 1))          # (nb*C, 1)

    # --- lane-dense flat layout; pad N so every grid step is full ---
    x_flat = x.reshape(n, c, hw)
    if n_pad != n:
        x_flat = jnp.pad(x_flat, ((0, n_pad - n), (0, 0), (0, 0)))

    vmem_limit = int(min(max(vmem_estimate(nb), 16 << 20), 40 << 20))

    # --- cost hint for the XLA scheduler ---
    matmul_flops = 2 * n_pad * (
        c * hw * sp               # fused pooling
        + mip * c * sp            # conv1 on the padded strip
        + 2 * c * mip * sp        # conv_h + conv_w (padded strips)
        + c * hw * sp             # gate expansion matmuls
    )
    elem_flops = 6 * n_pad * c * hw + 10 * n_pad * mip * sp
    cost = pl.CostEstimate(
        flops=int(matmul_flops + elem_flops),
        transcendentals=int(2 * n_pad * c * sp),
        bytes_accessed=int(2 * n_pad * c * hw * itemsize + const_bytes
                           + weight_bytes(nb)),
    )

    def const_spec(shape):
        return pl.BlockSpec(shape, lambda i: (0, 0))

    out_flat = pl.pallas_call(
        _coordatt_kernel,
        out_shape=jax.ShapeDtypeStruct((n_pad, c, hw), x.dtype),
        grid=(grid_len,),
        in_specs=[
            pl.BlockSpec((nb, c, hw), lambda i: (i, 0, 0)),   # x (lane-dense)
            const_spec((hw, sp)),                             # packed pooling matrix
            const_spec((hp, hw)),                             # Eh expansion
            const_spec((wp, hw)),                             # Ew expansion
            const_spec((nb * mip, nb * c)),                   # block-diag conv1 (+BN)
            const_spec((nb * mip, 1)),                        # folded bias/BN shift
            const_spec((nb * c, nb * mip)),                   # block-diag conv_h
            const_spec((nb * c, 1)),                          # bh
            const_spec((nb * c, nb * mip)),                   # block-diag conv_w
            const_spec((nb * c, 1)),                          # bw
        ],
        out_specs=pl.BlockSpec((nb, c, hw), lambda i: (i, 0, 0)),
        compiler_params=pltpu.CompilerParams(
            dimension_semantics=("parallel",),
            vmem_limit_bytes=vmem_limit,
        ),
        cost_estimate=cost,
    )(x_flat, p_mat, eh, ew, w1_blk, s1_t, wh_blk, bh_t, ww_blk, bw_t)

    return out_flat[:n].reshape(n, c, h, w)


def coord_att_ref(x, params):
    """Pure-JAX reference with the PyTorch CoordAtt semantics (NCHW, eval-mode BN)."""
    w1, b1, bn_scale, bn_shift, wh, bh, ww, bw = params
    n, c, h, w = x.shape
    xf = x.astype(jnp.float32)
    x_h = jnp.mean(xf, axis=3)                            # (N, C, H)
    x_w = jnp.mean(xf, axis=2)                            # (N, C, W)
    y = jnp.concatenate([x_h, x_w], axis=2)               # (N, C, H+W)
    y = jnp.einsum('mc,nct->nmt', w1, y, precision=_HI) + b1.reshape(1, -1, 1)
    y = y * bn_scale.reshape(1, -1, 1) + bn_shift.reshape(1, -1, 1)
    y = y * (jnp.clip(y + 3.0, 0.0, 6.0) / 6.0)
    y_h, y_w = y[:, :, :h], y[:, :, h:]
    a_h = jax.nn.sigmoid(jnp.einsum('cm,nmt->nct', wh, y_h, precision=_HI)
                         + bh.reshape(1, -1, 1))
    a_w = jax.nn.sigmoid(jnp.einsum('cm,nmt->nct', ww, y_w, precision=_HI)
                         + bw.reshape(1, -1, 1))
    out = xf * a_h[:, :, :, None] * a_w[:, :, None, :]
    return out.astype(x.dtype)


def init_params(key, channels, reduction=32):
    """Deterministic synthetic parameters matching CoordAtt.__init__ shapes."""
    inp = oup = channels
    mip = max(8, inp // reduction)
    ks = jax.random.split(key, 8)
    # 1x1 conv weights (out, in, 1, 1) squeezed to (out, in)
    w1 = 0.1 * jax.random.normal(ks[0], (mip, inp), jnp.float32)
    b1 = 0.1 * jax.random.normal(ks[1], (mip, 1), jnp.float32)
    # BatchNorm2d(mip) eval-mode params -> folded to per-channel scale/shift
    gamma = 1.0 + 0.1 * jax.random.normal(ks[2], (mip,), jnp.float32)
    beta = 0.1 * jax.random.normal(ks[3], (mip,), jnp.float32)
    running_mean = jnp.zeros((mip,), jnp.float32)
    running_var = jnp.ones((mip,), jnp.float32)
    eps = 1e-5
    bn_scale = (gamma / jnp.sqrt(running_var + eps)).reshape(mip, 1)
    bn_shift = (beta - running_mean * bn_scale[:, 0]).reshape(mip, 1)
    wh = 0.1 * jax.random.normal(ks[4], (oup, mip), jnp.float32)
    bh = 0.1 * jax.random.normal(ks[5], (oup, 1), jnp.float32)
    ww = 0.1 * jax.random.normal(ks[6], (oup, mip), jnp.float32)
    bw = 0.1 * jax.random.normal(ks[7], (oup, 1), jnp.float32)
    return (w1, b1, bn_scale, bn_shift, wh, bh, ww, bw)


if __name__ == "__main__":
    key = jax.random.PRNGKey(0)
    k_x, k_p = jax.random.split(key)

    N, C, H, W = 2, 4, 16, 16          # small shapes; mip = max(8, 4//32) = 8
    x = jax.random.normal(k_x, (N, C, H, W), jnp.float32)
    params = init_params(k_p, C, reduction=32)

    out = jax.block_until_ready(coord_att(x, params))
    ref = coord_att_ref(x, params)

    assert out.shape == x.shape and out.dtype == x.dtype
    # The dominant matmuls run with bf16 operands at DEFAULT MXU precision
    # (per the perf review), so allow ~bf16-level rounding vs the f32 reference.
    max_err = float(jnp.max(jnp.abs(out - ref)))
    assert max_err < 3e-2, f"mismatch vs reference: max abs err {max_err}"

    print("KERNEL_OK")
</pallas_src>

<mosaic_0001>
module attributes {stable_mosaic.version = 11 : i64} {
  func.func @_coordatt_kernel(%arg0: i32, %arg1: memref<1x4x256xf32, #tpu.memory_space<vmem>>, %arg2: memref<256x256xbf16, #tpu.memory_space<vmem>>, %arg3: memref<128x256xbf16, #tpu.memory_space<vmem>>, %arg4: memref<128x256xbf16, #tpu.memory_space<vmem>>, %arg5: memref<8x4xf32, #tpu.memory_space<vmem>>, %arg6: memref<8x1xf32, #tpu.memory_space<vmem>>, %arg7: memref<4x8xf32, #tpu.memory_space<vmem>>, %arg8: memref<4x1xf32, #tpu.memory_space<vmem>>, %arg9: memref<4x8xf32, #tpu.memory_space<vmem>>, %arg10: memref<4x1xf32, #tpu.memory_space<vmem>>, %arg11: memref<1x4x256xf32, #tpu.memory_space<vmem>>) attributes {dimension_semantics = [#tpu.dimension_semantics<parallel>], iteration_bounds = array<i64: 2>, scalar_prefetch = 0 : i64, scratch_operands = 0 : i64, tpu.core_type = #tpu.core_type<tc>, window_params = [{transform_indices = @transform_0, window_bounds = array<i64: 1, 4, 256>}, {pipeline_mode = #tpu.pipeline_mode<synchronous>, transform_indices = @transform_1, window_bounds = array<i64: 256, 256>}, {pipeline_mode = #tpu.pipeline_mode<synchronous>, transform_indices = @transform_2, window_bounds = array<i64: 128, 256>}, {pipeline_mode = #tpu.pipeline_mode<synchronous>, transform_indices = @transform_3, window_bounds = array<i64: 128, 256>}, {pipeline_mode = #tpu.pipeline_mode<synchronous>, transform_indices = @transform_4, window_bounds = array<i64: 8, 4>}, {pipeline_mode = #tpu.pipeline_mode<synchronous>, transform_indices = @transform_5, window_bounds = array<i64: 8, 1>}, {pipeline_mode = #tpu.pipeline_mode<synchronous>, transform_indices = @transform_6, window_bounds = array<i64: 4, 8>}, {pipeline_mode = #tpu.pipeline_mode<synchronous>, transform_indices = @transform_7, window_bounds = array<i64: 4, 1>}, {pipeline_mode = #tpu.pipeline_mode<synchronous>, transform_indices = @transform_8, window_bounds = array<i64: 4, 8>}, {pipeline_mode = #tpu.pipeline_mode<synchronous>, transform_indices = @transform_9, window_bounds = array<i64: 4, 1>}, {transform_indices = @transform_10, window_bounds = array<i64: 1, 4, 256>}]} {
    %c0 = arith.constant 0 : index
    %c0_0 = arith.constant 0 : index
    %c0_1 = arith.constant 0 : index
    %0 = vector.load %arg1[%c0, %c0_0, %c0_1] : memref<1x4x256xf32, #tpu.memory_space<vmem>>, vector<1x4x256xf32>
    %1 = vector.shape_cast %0 : vector<1x4x256xf32> to vector<4x256xf32>
    %2 = arith.truncf %1 : vector<4x256xf32> to vector<4x256xbf16>
    %c0_2 = arith.constant 0 : index
    %c0_3 = arith.constant 0 : index
    %3 = vector.load %arg2[%c0_2, %c0_3] : memref<256x256xbf16, #tpu.memory_space<vmem>>, vector<256x256xbf16>
    %cst = arith.constant dense<0.000000e+00> : vector<4x256xf32>
    %4 = tpu.matmul %2, %3, %cst {dimension_numbers = #tpu.dot_dimension_numbers<[1], [0], [0], [1], [0, 0, 1, 1], [], []>} : vector<4x256xbf16>, vector<256x256xbf16>, vector<4x256xf32> -> vector<4x256xf32>
    %c0_4 = arith.constant 0 : index
    %c0_5 = arith.constant 0 : index
    %5 = vector.load %arg5[%c0_4, %c0_5] : memref<8x4xf32, #tpu.memory_space<vmem>>, vector<8x4xf32>
    %cst_6 = arith.constant dense<0.000000e+00> : vector<8x256xf32>
    %6 = tpu.matmul %5, %4, %cst_6 {dimension_numbers = #tpu.dot_dimension_numbers<[1], [0], [0], [1], [0, 0, 1, 1], [], []>} : vector<8x4xf32>, vector<4x256xf32>, vector<8x256xf32> -> vector<8x256xf32>
    %c0_7 = arith.constant 0 : index
    %c0_8 = arith.constant 0 : index
    %7 = vector.load %arg6[%c0_7, %c0_8] : memref<8x1xf32, #tpu.memory_space<vmem>>, vector<8x1xf32>
    %8 = vector.broadcast %7 : vector<8x1xf32> to vector<8x256xf32>
    %9 = arith.addf %6, %8 : vector<8x256xf32>
    %cst_9 = arith.constant 3.000000e+00 : f32
    %10 = vector.broadcast %cst_9 : f32 to vector<8x256xf32>
    %11 = arith.addf %9, %10 : vector<8x256xf32>
    %cst_10 = arith.constant 0.000000e+00 : f32
    %cst_11 = arith.constant 6.000000e+00 : f32
    %12 = vector.broadcast %cst_10 : f32 to vector<8x256xf32>
    %13 = arith.maximumf %12, %11 : vector<8x256xf32>
    %14 = vector.broadcast %cst_11 : f32 to vector<8x256xf32>
    %15 = arith.minimumf %14, %13 : vector<8x256xf32>
    %cst_12 = arith.constant 0.166666672 : f32
    %16 = vector.broadcast %cst_12 : f32 to vector<8x256xf32>
    %17 = arith.mulf %15, %16 : vector<8x256xf32>
    %18 = arith.mulf %9, %17 : vector<8x256xf32>
    %c0_13 = arith.constant 0 : index
    %c0_14 = arith.constant 0 : index
    %19 = vector.load %arg7[%c0_13, %c0_14] : memref<4x8xf32, #tpu.memory_space<vmem>>, vector<4x8xf32>
    %20 = vector.extract_strided_slice %18 {offsets = [0, 0], sizes = [8, 128], strides = [1, 1]} : vector<8x256xf32> to vector<8x128xf32>
    %cst_15 = arith.constant dense<0.000000e+00> : vector<4x128xf32>
    %21 = tpu.matmul %19, %20, %cst_15 {dimension_numbers = #tpu.dot_dimension_numbers<[1], [0], [0], [1], [0, 0, 1, 1], [], []>} : vector<4x8xf32>, vector<8x128xf32>, vector<4x128xf32> -> vector<4x128xf32>
    %c0_16 = arith.constant 0 : index
    %c0_17 = arith.constant 0 : index
    %22 = vector.load %arg8[%c0_16, %c0_17] : memref<4x1xf32, #tpu.memory_space<vmem>>, vector<4x1xf32>
    %23 = vector.broadcast %22 : vector<4x1xf32> to vector<4x128xf32>
    %24 = arith.addf %21, %23 : vector<4x128xf32>
    %25 = arith.negf %24 : vector<4x128xf32>
    %26 = math.exp %25 : vector<4x128xf32>
    %cst_18 = arith.constant 1.000000e+00 : f32
    %27 = vector.broadcast %cst_18 : f32 to vector<4x128xf32>
    %28 = arith.addf %27, %26 : vector<4x128xf32>
    %29 = arith.divf %27, %28 : vector<4x128xf32>
    %c0_19 = arith.constant 0 : index
    %c0_20 = arith.constant 0 : index
    %30 = vector.load %arg9[%c0_19, %c0_20] : memref<4x8xf32, #tpu.memory_space<vmem>>, vector<4x8xf32>
    %31 = vector.extract_strided_slice %18 {offsets = [0, 128], sizes = [8, 128], strides = [1, 1]} : vector<8x256xf32> to vector<8x128xf32>
    %cst_21 = arith.constant dense<0.000000e+00> : vector<4x128xf32>
    %32 = tpu.matmul %30, %31, %cst_21 {dimension_numbers = #tpu.dot_dimension_numbers<[1], [0], [0], [1], [0, 0, 1, 1], [], []>} : vector<4x8xf32>, vector<8x128xf32>, vector<4x128xf32> -> vector<4x128xf32>
    %c0_22 = arith.constant 0 : index
    %c0_23 = arith.constant 0 : index
    %33 = vector.load %arg10[%c0_22, %c0_23] : memref<4x1xf32, #tpu.memory_space<vmem>>, vector<4x1xf32>
    %34 = vector.broadcast %33 : vector<4x1xf32> to vector<4x128xf32>
    %35 = arith.addf %32, %34 : vector<4x128xf32>
    %36 = arith.negf %35 : vector<4x128xf32>
    %37 = math.exp %36 : vector<4x128xf32>
    %cst_24 = arith.constant 1.000000e+00 : f32
    %38 = vector.broadcast %cst_24 : f32 to vector<4x128xf32>
    %39 = arith.addf %38, %37 : vector<4x128xf32>
    %40 = arith.divf %38, %39 : vector<4x128xf32>
    %41 = arith.truncf %29 : vector<4x128xf32> to vector<4x128xbf16>
    %c0_25 = arith.constant 0 : index
    %c0_26 = arith.constant 0 : index
    %42 = vector.load %arg3[%c0_25, %c0_26] : memref<128x256xbf16, #tpu.memory_space<vmem>>, vector<128x256xbf16>
    %cst_27 = arith.constant dense<0.000000e+00> : vector<4x256xf32>
    %43 = tpu.matmul %41, %42, %cst_27 {dimension_numbers = #tpu.dot_dimension_numbers<[1], [0], [0], [1], [0, 0, 1, 1], [], []>} : vector<4x128xbf16>, vector<128x256xbf16>, vector<4x256xf32> -> vector<4x256xf32>
    %44 = arith.truncf %40 : vector<4x128xf32> to vector<4x128xbf16>
    %c0_28 = arith.constant 0 : index
    %c0_29 = arith.constant 0 : index
    %45 = vector.load %arg4[%c0_28, %c0_29] : memref<128x256xbf16, #tpu.memory_space<vmem>>, vector<128x256xbf16>
    %cst_30 = arith.constant dense<0.000000e+00> : vector<4x256xf32>
    %46 = tpu.matmul %44, %45, %cst_30 {dimension_numbers = #tpu.dot_dimension_numbers<[1], [0], [0], [1], [0, 0, 1, 1], [], []>} : vector<4x128xbf16>, vector<128x256xbf16>, vector<4x256xf32> -> vector<4x256xf32>
    %47 = arith.mulf %43, %46 : vector<4x256xf32>
    %c0_31 = arith.constant 0 : index
    %c0_32 = arith.constant 0 : index
    %c0_33 = arith.constant 0 : index
    %48 = vector.load %arg1[%c0_31, %c0_32, %c0_33] : memref<1x4x256xf32, #tpu.memory_space<vmem>>, vector<1x4x256xf32>
    %49 = vector.shape_cast %48 : vector<1x4x256xf32> to vector<4x256xf32>
    %50 = arith.mulf %49, %47 : vector<4x256xf32>
    %c0_34 = arith.constant 0 : index
    %c0_35 = arith.constant 0 : index
    %c0_36 = arith.constant 0 : index
    %51 = vector.load %arg11[%c0_34, %c0_35, %c0_36] : memref<1x4x256xf32, #tpu.memory_space<vmem>>, vector<1x4x256xf32>
    %52 = vector.shape_cast %51 : vector<1x4x256xf32> to vector<4x256xf32>
    %53 = vector.shape_cast %50 : vector<4x256xf32> to vector<1x4x256xf32>
    tpu.vector_store %arg11[%c0_34, %c0_35, %c0_36], %53 {strides = array<i32>} : memref<1x4x256xf32, #tpu.memory_space<vmem>>, vector<1x4x256xf32>,
    return
  }
  func.func @transform_0(%arg0: i32) -> (i32, i32, i32) {
    %c0_i32 = arith.constant 0 : i32
    %c0_i32_0 = arith.constant 0 : i32
    %c0_i32_1 = arith.constant 0 : i32
    return %arg0, %c0_i32, %c0_i32_0 : i32, i32, i32
  }
  func.func @transform_1(%arg0: i32) -> (i32, i32) {
    %c0_i32 = arith.constant 0 : i32
    %c0_i32_0 = arith.constant 0 : i32
    %c0_i32_1 = arith.constant 0 : i32
    return %c0_i32, %c0_i32_0 : i32, i32
  }
  func.func @transform_2(%arg0: i32) -> (i32, i32) {
    %c0_i32 = arith.constant 0 : i32
    %c0_i32_0 = arith.constant 0 : i32
    %c0_i32_1 = arith.constant 0 : i32
    return %c0_i32, %c0_i32_0 : i32, i32
  }
  func.func @transform_3(%arg0: i32) -> (i32, i32) {
    %c0_i32 = arith.constant 0 : i32
    %c0_i32_0 = arith.constant 0 : i32
    %c0_i32_1 = arith.constant 0 : i32
    return %c0_i32, %c0_i32_0 : i32, i32
  }
  func.func @transform_4(%arg0: i32) -> (i32, i32) {
    %c0_i32 = arith.constant 0 : i32
    %c0_i32_0 = arith.constant 0 : i32
    %c0_i32_1 = arith.constant 0 : i32
    return %c0_i32, %c0_i32_0 : i32, i32
  }
  func.func @transform_5(%arg0: i32) -> (i32, i32) {
    %c0_i32 = arith.constant 0 : i32
    %c0_i32_0 = arith.constant 0 : i32
    %c0_i32_1 = arith.constant 0 : i32
    return %c0_i32, %c0_i32_0 : i32, i32
  }
  func.func @transform_6(%arg0: i32) -> (i32, i32) {
    %c0_i32 = arith.constant 0 : i32
    %c0_i32_0 = arith.constant 0 : i32
    %c0_i32_1 = arith.constant 0 : i32
    return %c0_i32, %c0_i32_0 : i32, i32
  }
  func.func @transform_7(%arg0: i32) -> (i32, i32) {
    %c0_i32 = arith.constant 0 : i32
    %c0_i32_0 = arith.constant 0 : i32
    %c0_i32_1 = arith.constant 0 : i32
    return %c0_i32, %c0_i32_0 : i32, i32
  }
  func.func @transform_8(%arg0: i32) -> (i32, i32) {
    %c0_i32 = arith.constant 0 : i32
    %c0_i32_0 = arith.constant 0 : i32
    %c0_i32_1 = arith.constant 0 : i32
    return %c0_i32, %c0_i32_0 : i32, i32
  }
  func.func @transform_9(%arg0: i32) -> (i32, i32) {
    %c0_i32 = arith.constant 0 : i32
    %c0_i32_0 = arith.constant 0 : i32
    %c0_i32_1 = arith.constant 0 : i32
    return %c0_i32, %c0_i32_0 : i32, i32
  }
  func.func @transform_10(%arg0: i32) -> (i32, i32, i32) {
    %c0_i32 = arith.constant 0 : i32
    %c0_i32_0 = arith.constant 0 : i32
    %c0_i32_1 = arith.constant 0 : i32
    return %arg0, %c0_i32, %c0_i32_0 : i32, i32, i32
  }
}

</mosaic_0001>

<bundles_post_ra>
// kernel: tpu_custom_call.1
= control target key start
LH: loop header
LB: loop body
LE: loop exit
PB: predicated region body
PF: predicated region fallthrough
CT: control target
= control target key end

     0   :  { %15 = vsyncpa [#allocation3], 0  ;;  %s1969_s0 = inlined_call_operand.vmem [shape: f32[2,4,256], index: 0, kind: input, shape index: {}]   ;;  %s1970_s1 = inlined_call_operand.hbm [shape: bf16[256,256], index: 1, kind: input, shape index: {}]   ;;  %s1971_s2 = inlined_call_operand.hbm [shape: bf16[128,256], index: 2, kind: input, shape index: {}]   ;;  %s1972_s3 = inlined_call_operand.hbm [shape: bf16[128,256], index: 3, kind: input, shape index: {}]   ;;  %s1973_s4 = inlined_call_operand.vmem [shape: f32[8,4], index: 4, kind: input, shape index: {}]   ;;  %s1974_s5 = inlined_call_operand.vmem [shape: f32[8,1], index: 5, kind: input, shape index: {}]   ;;  %s1975_s6 = inlined_call_operand.vmem [shape: f32[4,8], index: 6, kind: input, shape index: {}]   ;;  %s1976_s7 = inlined_call_operand.vmem [shape: f32[4,1], index: 7, kind: input, shape index: {}]   ;;  %s1977_s8 = inlined_call_operand.vmem [shape: f32[4,8], index: 8, kind: input, shape index: {}]   ;;  %s1978_s9 = inlined_call_operand.vmem [shape: f32[4,1], index: 9, kind: input, shape index: {}]   ;;  %s1979_s10 = inlined_call_operand.hbm [shape: f32[2,4,256], index: 10, kind: output, shape index: {}]  }
   0x1   :  { %16 = vsyncpa [#allocation6], 0 }
   0x2   :  { %17 = vsyncpa [#allocation4], 0 }
   0x3   :  { %19 = vsyncpa [#allocation4 + $0x1], 0  ;;  %s1802_s13 = smov 0   ;;  %s1804_s14 = smov 0  }
   0x4   :  { %s1806_s15 = smov 0   ;;  %s1808_s16 = smov 0  }
   0x5 LB: > { %s1823_s17 = sadd.s32 4294967295, %s1736_s16   ;;  %s1303_s18 = sadd.s32 4294967294, %s1736_s16   ;;  %s1736_s16 = sphi %s1808_s16, %s1997_s16   ;;  %s1732_s15 = sphi %s1806_s15, %s1996_s15   ;;  %s1728_s14 = sphi %s1804_s14, %s1995_s14   ;;  %s1724_s13 = sphi %s1802_s13, %s1994_s13  }
   0x6   : > { %s1827_s19 = sadd.s32 1, %s1736_s16   ;;  %s247_s20 = sadd.s32 1, %s1732_s15 }
   0x7   : > { %s244_s21 = ssub.s32 %s1736_s16, %s1827_s19  ;;  %p257_p0 = scmp.ne.s32.totalorder %s1732_s15, %s1728_s14 }
   0x8   : > { %p245_p1 = scmp.eq.s32.totalorder %s244_s21, 0  ;;  %p258_p2 = scmp.eq.s32.totalorder %s1823_s17, 1 }
   0x9   : > { %p263_p3 = scmp.ne.s32.totalorder %s1728_s14, %s1724_s13  ;;  %p264_p4 = scmp.eq.s32.totalorder %s1303_s18, 1 }
   0xa   : > { %s1838_s22 = scalar_select %p245_p1, %s1732_s15, %s247_s20  }
   0xb   : > { %p1840_p5 = por %p258_p2, %p257_p0  ;;  %p1844_p6 = por %p264_p4, %p263_p3 }
   0xc   : > { %1982 = sst [smem:[#allocation12_spill]] %s1838_s22  ;;  %p1304_p7 = scmp.ge.s32.totalorder %s1736_s16, 1 }
   0xd   : > { %s1983_s23 = scalar_select %p1840_p5, 1, 0 }
   0xe   : > { %s1984_s24 = scalar_select %p1844_p6, 1, 0 }
   0xf   : > { %p271_p8 = scmp.lt.s32.totalorder %s1736_s16, 3  ;;  %p1980_p9 = scmp.eq.s32.totalorder %s1823_s17, 0 }
  0x10   : > { %s1738_s26 = smov [#allocation5]   ;;  %s1739_s29 = smov [#allocation2]  }
  0x11   : > { %p1851_p10 = pnand %p1304_p7, %p271_p8  ;;  %s296_s27 = sshll.u32 %s1738_s26, 4  ;;  %s297_s27 = int_to_ptr.vmem [resolvable:$true] %s296_s27 }
  0x12   : > { %s283_s30 = sshll.u32 %s1739_s29, 4  ;;  %s1740_s11 = smov [#allocation7]   ;;  %s284_s30 = int_to_ptr.vmem [resolvable:$true] %s283_s30 }
  0x13   : > { %p1422_p11 = pneg %p1851_p10  ;;  %s309_s12 = sshll.u32 %s1740_s11, 4  ;;  %s310_s12 = int_to_ptr.vmem [resolvable:$true] %s309_s12 }
  0x14   : > { %s1601_s18 = scalar_lea.vmem %s297_s27, 2048  ;;  %p1609_p3 = scmp.lt.s32.totalorder %s297_s27, %s297_s27 }
  0x15   : > { %p1859_p12 = pnand %p1980_p9, %p1422_p11  ;;  %p1602_p0 = scmp.ne.s32.totalorder %s297_s27, %s1601_s18 }
  0x16   : > { %p1610_p4 = scmp.lt.s32.totalorder %s1601_s18, %s1601_s18 }
  0x17   : > { %p1592_p13 = pneg %p1859_p12 }
  0x18   : > { %p1611_p7 = por %p1610_p4, %p1609_p3 }
  0x19   : > { %p1604_p1 = pnand %p1602_p0, %p1592_p13 }
  0x1b   : > { %p1605_p2 = pneg %p1604_p1 }
  0x1d   : > { %p1612_p8 = pnand %p1611_p7, %p1605_p2 }
  0x1f   : > { %1615 = shalt.err (!%p1612_p8)
}
  0x20   : > { %s1741_s20 = smov 128   ;;  %s1742_s21 = smov 8  }
  0x21   : > { %1428 = dma.hbm_to_vmem [thread:$0]  (!%p1859_p12), %s1971_s2, 2048, %s297_s27, [#allocation6], %s1741_s20, %s1741_s20, %s1742_s21  }
  0x22   : > { %s1627_s11 = scalar_lea.vmem %s284_s30, 4096  ;;  %p1635_p9 = scmp.lt.s32.totalorder %s284_s30, %s284_s30 }
  0x23   : > { %p1628_p11 = scmp.ne.s32.totalorder %s284_s30, %s1627_s11  ;;  %p1636_p6 = scmp.lt.s32.totalorder %s1627_s11, %s1627_s11 }
  0x25   : > { %p1630_p0 = pnand %p1628_p11, %p1592_p13  ;;  %p1637_p3 = por %p1636_p6, %p1635_p9 }
  0x27   : > { %p1631_p1 = pneg %p1630_p0 }
  0x29   : > { %p1638_p2 = pnand %p1637_p3, %p1631_p1 }
  0x2b   : > { %1641 = shalt.err (!%p1638_p2)
}
  0x2c   : > { %1425 = dma.hbm_to_vmem [thread:$0]  (!%p1859_p12), %s1970_s1, 4096, %s284_s30, [#allocation3], %s1741_s20, %s1741_s20, %s1742_s21  }
  0x2d   : > { %s1653_s27 = scalar_lea.vmem %s310_s12, 2048  ;;  %p1661_p11 = scmp.lt.s32.totalorder %s310_s12, %s310_s12 }
  0x2e   : > { %p1654_p4 = scmp.ne.s32.totalorder %s310_s12, %s1653_s27  ;;  %p1662_p0 = scmp.lt.s32.totalorder %s1653_s27, %s1653_s27 }
  0x30   : > { %p1656_p7 = pnand %p1654_p4, %p1592_p13  ;;  %p1663_p5 = por %p1662_p0, %p1661_p11 }
  0x32   : > { %p1657_p8 = pneg %p1656_p7 }
  0x34   : > { %p1664_p6 = pnand %p1663_p5, %p1657_p8 }
  0x36   : > { %1667 = shalt.err (!%p1664_p6)
}
  0x37   : > { %1431 = dma.hbm_to_vmem [thread:$0]  (!%p1859_p12), %s1972_s3, 2048, %s310_s12, [#allocation6], %s1741_s20, %s1741_s20, %s1742_s21  }
  0x38   : > { %351 = sbr.rel (%p1851_p10) target bundleno = 1008 (0x3f0), region = 60  ;;  %p1987_p9 = scmp.eq.s32.totalorder (!%p1851_p10), %s1823_s17, 0 }
  0x3d   : > { %1711 = dma.done.wait (%p1987_p9), [#allocation3], 4096   ;;  %p1988_p13 = pmov %p1987_p9 }
  0x3e   : > { %p1989_p1 = pmov %p1987_p9 }
  0x3f   : > { %1713 = vsyncadd (%p1988_p13), [#allocation3], 4294963200 }
  0x40   : > { %1715 = dma.done.wait (%p1989_p1), [#allocation6], 4096   ;;  %p1990_p5 = pmov %p1989_p1 }
  0x41   : > { %v1485_v0 = vld [vmem:[#allocation2 + $0x74] ss:$8 sps:$4 sm:$0xff]   ;;  %v1487_v1 = vld [vmem:[#allocation2 + $0x70] ss:$8 sps:$4 sm:$0xff]   ;;  %v1488_v2 = vld [vmem:[#allocation2 + $0x64] ss:$8 sps:$4 sm:$0xff]  }
  0x42   : > { %1717 = vsyncadd (%p1990_p5), [#allocation6], 4294963200  ;;  %601 = vmatprep.subr.bf16.mxu0 %v1485_v0  ;;  %v1490_v3 = vld [vmem:[#allocation2 + $0x60] ss:$8 sps:$4 sm:$0xff]   ;;  %v1491_v4 = vld [vmem:[#allocation2 + $0x54] ss:$8 sps:$4 sm:$0xff]  }
  0x43   : > { %602 = vmatpush1.bf16.msra.mxu0 %v1487_v1  ;;  %v1493_v5 = vld [vmem:[#allocation2 + $0x50] ss:$8 sps:$4 sm:$0xff]   ;;  %p397_p10 = scmp.lt.s32.totalorder %s1823_s17, 1  ;;  %v1494_v6 = vld [vmem:[#allocation2 + $0x44] ss:$8 sps:$4 sm:$0xff]   ;;  %v1743_v36 = vmov 0.0  }
  0x44   : > { %603 = vmatprep.subr.bf16.mxu0 %v1488_v2  ;;  %v1496_v7 = vld [vmem:[#allocation2 + $0x40] ss:$8 sps:$4 sm:$0xff]   ;;  %v1497_v8 = vld [vmem:[#allocation2 + $0x34] ss:$8 sps:$4 sm:$0xff]   ;;  %v1499_v9 = vld [vmem:[#allocation2 + $0x30] ss:$8 sps:$4 sm:$0xff]   ;;  %1398 = vmatprep.subr.mxu1 %v1743_v36 }
  0x45   : > { %s398_s22 = scalar_select %p397_p10, %s1823_s17, 1  ;;  %v1500_v10 = vld [vmem:[#allocation2 + $0x24] ss:$8 sps:$4 sm:$0xff]   ;;  %v1502_v11 = vld [vmem:[#allocation2 + $0x20] ss:$8 sps:$4 sm:$0xff]   ;;  %v1744_v38 = vmov 0  }
  0x46   : > { %v1503_v12 = vld [vmem:[#allocation2 + $0x14] ss:$8 sps:$4 sm:$0xff]   ;;  %v1505_v13 = vld [vmem:[#allocation2 + $0x10] ss:$8 sps:$4 sm:$0xff]   ;;  %v1506_v15 = vld [vmem:[#allocation2 + $0x4] ss:$8 sps:$4 sm:$0xff]   ;;  %1483 = vset.pattern.permute.xlu0 %v1744_v38  ;;  %1484 = vset.pattern.permute.xlu1 %v1744_v38 }
  0x47   : > { %604 = vmatpush1.bf16.msra.mxu0 %v1490_v3  ;;  %s1392_s25 = sshll.u32 %s398_s22, 3  ;;  %v1508_v18 = vld [vmem:[#allocation2] ss:$8 sps:$4 sm:$0xff]   ;;  %v1509_v19 = vld [vmem:[#allocation2 + $0xf4] ss:$8 sps:$4 sm:$0xff]   ;;  %vm653_vm0 = vcmask 1043456  }
  0x48   : > { %605 = vmatprep.subr.bf16.mxu0 %v1491_v4  ;;  %s401_s12 = scalar_lea.vmem %s1969_s0, %s1392_s25  ;;  %v1511_v20 = vld [vmem:[#allocation2 + $0xf0] ss:$8 sps:$4 sm:$0xff]   ;;  %v1512_v21 = vld [vmem:[#allocation2 + $0xe4] ss:$8 sps:$4 sm:$0xff]   ;;  %v1514_v22 = vld [vmem:[#allocation2 + $0xe0] ss:$8 sps:$4 sm:$0xff]  }
  0x49   : > { %v1904_v14 = vld [vmem:[%s401_s12] sm:$0xff]  ;;  %v1515_v23 = vld [vmem:[#allocation2 + $0xd4] ss:$8 sps:$4 sm:$0xff]   ;;  %v1517_v24 = vld [vmem:[#allocation2 + $0xd0] ss:$8 sps:$4 sm:$0xff]   ;;  %vm649_vm1 = vcmask 31744  }
  0x4a   : > { %v405_v16 = vcombine.high %v1904_v14, %v1904_v14  ;;  %v1518_v25 = vld [vmem:[#allocation2 + $0xc4] ss:$8 sps:$4 sm:$0xff]   ;;  %v1520_v26 = vld [vmem:[#allocation2 + $0xc0] ss:$8 sps:$4 sm:$0xff]   ;;  %v1521_v27 = vld [vmem:[#allocation2 + $0xb4] ss:$8 sps:$4 sm:$0xff]   ;;  %v407_v35 = vpack.c.bf16 %v1904_v14, %v1904_v14 }
  0x4b   : > { %606 = vmatpush1.bf16.msra.mxu0 %v1493_v5  ;;  %v1523_v28 = vld [vmem:[#allocation2 + $0xb0] ss:$8 sps:$4 sm:$0xff]   ;;  %v1524_v29 = vld [vmem:[#allocation2 + $0xa4] ss:$8 sps:$4 sm:$0xff]   ;;  %v1526_v30 = vld [vmem:[#allocation2 + $0xa0] ss:$8 sps:$4 sm:$0xff]  }
  0x4c   : > { %607 = vmatprep.subr.bf16.mxu0 %v1494_v6  ;;  %v408_v17 = vpack.c.bf16 %v405_v16, %v405_v16  ;;  %v1527_v31 = vld [vmem:[#allocation2 + $0x94] ss:$8 sps:$4 sm:$0xff]   ;;  %v1529_v32 = vld [vmem:[#allocation2 + $0x90] ss:$8 sps:$4 sm:$0xff]   ;;  %v1530_v33 = vld [vmem:[#allocation2 + $0x84] ss:$8 sps:$4 sm:$0xff]  }
  0x4d   : > { %v1532_v34 = vld [vmem:[#allocation2 + $0x80] ss:$8 sps:$4 sm:$0xff]   ;;  %vm1745_vm2 = vmmov 0   ;;  %vm748_vm3 = vcmask 64512   ;;  %v1536_v63 = vld [vmem:[#allocation5 + $0x74] ss:$8 sps:$4 sm:$0xff]  }
  0x4e   : > { %633 = vmatprep.mubr.bf16.mxu0 %v408_v17  ;;  %v643_v37 = vld [vmem:[%s1974_s5] sm:$0xff]  ;;  %1400 = vmatprep.mubr.msk.f32.mxu1 %vm1745_vm2, %v1743_v36  ;;  %v1534_v0 = vld [vmem:[#allocation5 + $0x70] ss:$8 sps:$4 sm:$0xff]   ;;  %v1542_v3 = vld [vmem:[#allocation5 + $0x54] ss:$8 sps:$4 sm:$0xff]   ;;  %s394_s20 = sand.u32 1, %s1728_s14  }
  0x4f   : > { %608 = vmatpush1.bf16.msra.mxu0 %v1496_v7  ;;  %646 = vperm.xlu0 %1483, %v643_v37   ;;  %v742_v39 = vld [vmem:[%s1976_s7] sm:$0xf]  ;;  %v1539_v1 = vld [vmem:[#allocation5 + $0x64] ss:$8 sps:$4 sm:$0xff]   ;;  %v1540_v4 = vld [vmem:[#allocation5 + $0x50] ss:$8 sps:$4 sm:$0xff]  }
  0x50   : > { %609 = vmatprep.subr.bf16.mxu0 %v1497_v8  ;;  %v642_v42 = vld [vmem:[%s1973_s4] sm:$0xff]  ;;  %v1548_v7 = vld [vmem:[#allocation5 + $0x34] ss:$8 sps:$4 sm:$0xff]   ;;  %v1546_v8 = vld [vmem:[#allocation5 + $0x30] ss:$8 sps:$4 sm:$0xff]   ;;  %s1313_s21 = sshll.u32 %s394_s20, 3 }
  0x51   : > { %v829_v45 = vld [vmem:[%s1978_s9] sm:$0xf]  ;;  %v1545_v5 = vld [vmem:[#allocation5 + $0x44] ss:$8 sps:$4 sm:$0xff]   ;;  %v1560_v16 = vld [vmem:[#allocation7 + $0x74] ss:$8 sps:$4 sm:$0xff]  }
  0x52   : > { %832 = vperm.xlu1 %1484, %v829_v45   ;;  %v741_v60 = vld [vmem:[%s1975_s6] sm:$0xf]  ;;  %v1569_v37 = vld [vmem:[#allocation7 + $0x44] ss:$8 sps:$4 sm:$0xff]   ;;  %v1576_v45 = vld [vmem:[#allocation7 + $0x10] ss:$8 sps:$4 sm:$0xff]  }
  0x53   : > { %610 = vmatpush1.bf16.msra.mxu0 %v1499_v9  ;;  %745 = vperm.xlu0 %1483, %v742_v39   ;;  %v828_v62 = vld [vmem:[%s1977_s8] sm:$0xf]  ;;  %s1393_s11 = sshll.u32 %s1823_s17, 7  ;;  %s396_s18 = scalar_lea.vmem [#allocation8], %s1313_s21 }
  0x54   : > { %611 = vmatprep.subr.bf16.mxu0 %v1500_v10  ;;  %v1537_v2 = vld [vmem:[#allocation5 + $0x60] ss:$8 sps:$4 sm:$0xff]   ;;  %v1551_v10 = vld [vmem:[#allocation5 + $0x24] ss:$8 sps:$4 sm:$0xff]   ;;  %s1213_s27 = sshll.u32 %s396_s18, 4  ;;  %s1211_s22 = scalar_lea.hbm %s1979_s10, %s1393_s11  ;;  %s1214_s27 = int_to_ptr.vmem [resolvable:$true] %s1213_s27 }
  0x55   : > { %v1543_v6 = vld [vmem:[#allocation5 + $0x40] ss:$8 sps:$4 sm:$0xff]   ;;  %s1199_s25 = scalar_lea.sflag [#allocation4], %s394_s20  ;;  %s1668_s28 = scalar_lea.vmem %s1214_s27, 128 }
  0x56   : > { %v1549_v9 = vld [vmem:[#allocation5 + $0x20] ss:$8 sps:$4 sm:$0xff]   ;;  %p1669_p12 = scmp.ne.s32.totalorder %s1214_s27, %s1668_s28  ;;  %p1991_p3 = scmp.ne.s32.totalorder %s1983_s23, 0 }
  0x57   : > { %612 = vmatpush1.bf16.msra.mxu0 %v1502_v11  ;;  %v1554_v11 = vld [vmem:[#allocation5 + $0x14] ss:$8 sps:$4 sm:$0xff]   ;;  %s1746_s30 = smov [#allocation8]  }
  0x58   : > { %613 = vmatprep.subr.bf16.mxu0 %v1503_v12  ;;  %v1552_v12 = vld [vmem:[#allocation5 + $0x10] ss:$8 sps:$4 sm:$0xff]   ;;  %p1670_p2 = pnand %p1669_p12, %p1991_p3  ;;  %s1672_s17 = sshll.u32 %s1746_s30, 4  ;;  %s1673_s17 = int_to_ptr.vmem [resolvable:$false] %s1672_s17 }
  0x59   : > { %s1674_s12 = scalar_lea.vmem %s1673_s17, 256  ;;  %p1675_p7 = scmp.lt.s32.totalorder %s1214_s27, %s1673_s17 }
  0x5a   : > { %p1671_p4 = pneg %p1670_p2  ;;  %p1676_p8 = scmp.lt.s32.totalorder %s1674_s12, %s1668_s28 }
  0x5b   : > { %614 = vmatpush1.bf16.msra.mxu0 %v1505_v13  ;;  %v1557_v13 = vld [vmem:[#allocation5 + $0x4] ss:$8 sps:$4 sm:$0xff]  }
  0x5c   : > { %615 = vmatprep.subr.bf16.mxu0 %v1506_v15  ;;  %v1555_v15 = vld [vmem:[#allocation5] ss:$8 sps:$4 sm:$0xff]   ;;  %p1677_p11 = por %p1676_p8, %p1675_p7 }
  0x5e   : > { %p1678_p0 = pnand %p1677_p11, %p1671_p4 }
  0x5f   : > { %616 = vmatpush1.bf16.msra.mxu0 %v1508_v18 }
  0x60   : > { %617 = vmatprep.subr.bf16.mxu0 %v1509_v19 }
  0x63   : > { %618 = vmatpush2.bf16.msra.mxu0 %v1511_v20 }
  0x64   : > { %619 = vmatprep.subr.bf16.mxu0 %v1512_v21 }
  0x67   : > { %620 = vmatpush2.bf16.msra.mxu0 %v1514_v22 }
  0x68   : > { %621 = vmatprep.subr.bf16.mxu0 %v1515_v23 }
  0x6b   : > { %622 = vmatpush2.bf16.msra.mxu0 %v1517_v24 }
  0x6c   : > { %623 = vmatprep.subr.bf16.mxu0 %v1518_v25 }
  0x6f   : > { %624 = vmatpush2.bf16.msra.mxu0 %v1520_v26 }
  0x70   : > { %625 = vmatprep.subr.bf16.mxu0 %v1521_v27 }
  0x73   : > { %626 = vmatpush2.bf16.msra.mxu0 %v1523_v28 }
  0x74   : > { %627 = vmatprep.subr.bf16.mxu0 %v1524_v29 }
  0x77   : > { %628 = vmatpush2.bf16.msra.mxu0 %v1526_v30  ;;  %v1558_v30 = vld [vmem:[#allocation7 + $0x70] ss:$8 sps:$4 sm:$0xff]  }
  0x78   : > { %629 = vmatprep.subr.bf16.mxu0 %v1527_v31 }
  0x7b   : > { %630 = vmatpush2.bf16.msra.mxu0 %v1529_v32  ;;  %v1563_v32 = vld [vmem:[#allocation7 + $0x64] ss:$8 sps:$4 sm:$0xff]  }
  0x7c   : > { %631 = vmatprep.subr.bf16.mxu0 %v1530_v33  ;;  %v1561_v33 = vld [vmem:[#allocation7 + $0x60] ss:$8 sps:$4 sm:$0xff]  }
  0x7f   : > { %632 = vmatpush2.bf16.msra.mxu0 %v1532_v34  ;;  %v1566_v34 = vld [vmem:[#allocation7 + $0x54] ss:$8 sps:$4 sm:$0xff]  }
  0x82   : > { %634 = vmatmul.mubr.bf16.vlgmr.msra.gmra.mxu0 %v407_v35 }
  0x83   : > { %724 = vmatprep.mubr.f32.mxu0 %v1743_v36 }
  0xca   : > { %v647_v46 = vpop.permute.xlu0 %646 }
  0xcd   : > { %v833_v25 = vpop.permute.xlu1 %832 }
  0xce   : > { %v746_v17 = vpop.permute.xlu0 %745 }
 0x142   : > { %v635_v40 = vpop.f32.mrf.mxu0 }
 0x144   : > { %v637_v41 = vpop.f32.mrf.mxu0 }
 0x145   : > { %1348 = vmatprep.subr.msk.mxu0 %vm653_vm0, %v637_v41  ;;  %v1572_v41 = vld [vmem:[#allocation7 + $0x34] ss:$8 sps:$4 sm:$0xff]  }
 0x146   : > { %v639_v43 = vpop.f32.mrf.mxu0  ;;  %1349 = vmatpush1.msk.msra.mxu0 %vm653_vm0, %v635_v40  ;;  %v1567_v40 = vld [vmem:[#allocation7 + $0x40] ss:$8 sps:$4 sm:$0xff]  }
 0x147   : > { %1350 = vmatmul.mubr.msk.f32.vlgmr.msra.gmra.mxu0 %vm649_vm1, %v642_v42  ;;  %v1570_v42 = vld [vmem:[#allocation7 + $0x30] ss:$8 sps:$4 sm:$0xff]   ;;  %v1575_v43 = vld [vmem:[#allocation7 + $0x24] ss:$8 sps:$4 sm:$0xff]  }
 0x148   : > { %v640_v44 = vpop.f32.mrf.mxu0 }
 0x149   : > { %v1573_v44 = vld [vmem:[#allocation7 + $0x20] ss:$8 sps:$4 sm:$0xff]  }
 0x207   : > { %v726_v47 = vpop.f32.mrf.mxu0 }
 0x208   : > { %v727_v48 = vadd.f32 %v726_v47, %v647_v46 }
 0x209   : > { %v728_v49 = vpop.f32.mrf.mxu0 }
 0x20a   : > { %v731_v50 = vadd.f32 3.0, %v727_v48  ;;  %v729_v51 = vadd.f32 %v728_v49, %v647_v46  ;;  %v1581_v46 = vld [vmem:[#allocation7 + $0x4] ss:$8 sps:$4 sm:$0xff]  }
 0x20c   : > { %v733_v52 = vmax.f32 %v731_v50, 0.0  ;;  %v732_v53 = vadd.f32 3.0, %v729_v51 }
 0x20e   : > { %v735_v54 = vmin.f32 %v733_v52, 6.0  ;;  %v734_v55 = vmax.f32 %v732_v53, 0.0 }
 0x210   : > { %v736_v56 = vmin.f32 %v734_v55, 6.0  ;;  %v737_v57 = vmul.f32 0.16666667, %v735_v54 }
 0x212   : > { %v738_v58 = vmul.f32 0.16666667, %v736_v56  ;;  %v739_v59 = vmul.f32 %v737_v57, %v727_v48  ;;  %v1579_v48 = vld [vmem:[#allocation7] ss:$8 sps:$4 sm:$0xff]  }
 0x214   : > { %v740_v61 = vmul.f32 %v738_v58, %v729_v51  ;;  %1399 = vmatpush3.msra.mxu1 %v739_v59 }
 0x215   : > { %1401 = vmatmul.mubr.msk.f32.vlgmr.msra.gmra.mxu1 %vm748_vm3, %v741_v60  ;;  %1403 = vmatprep.subr.mxu1 %v1743_v36 }
 0x216   : > { %1404 = vmatpush3.msra.mxu1 %v740_v61  ;;  %1405 = vmatprep.mubr.msk.f32.mxu1 %vm1745_vm2, %v1743_v36  ;;  %v1564_v36 = vld [vmem:[#allocation7 + $0x50] ss:$8 sps:$4 sm:$0xff]  }
 0x217   : > { %1011 = vmatprep.subr.bf16.mxu1 %v1536_v63 }
 0x219   : > { %1406 = vmatmul.mubr.msk.f32.vlgmr.msra.gmra.mxu1 %vm748_vm3, %v828_v62 }
 0x21a   : > { %1043 = vmatprep.mubr.bf16.mxu1 %v1744_v38  ;;  %1012 = vmatpush1.bf16.msra.mxu1 %v1534_v0 }
 0x21b   : > { %1013 = vmatprep.subr.bf16.mxu1 %v1539_v1 }
 0x21e   : > { %1014 = vmatpush1.bf16.msra.mxu1 %v1537_v2 }
 0x21f   : > { %1015 = vmatprep.subr.bf16.mxu1 %v1542_v3 }
 0x222   : > { %1016 = vmatpush1.bf16.msra.mxu1 %v1540_v4 }
 0x223   : > { %1017 = vmatprep.subr.bf16.mxu1 %v1545_v5 }
 0x226   : > { %1018 = vmatpush1.bf16.msra.mxu1 %v1543_v6 }
 0x227   : > { %1019 = vmatprep.subr.bf16.mxu1 %v1548_v7 }
 0x22a   : > { %1020 = vmatpush1.bf16.msra.mxu1 %v1546_v8 }
 0x22b   : > { %1021 = vmatprep.subr.bf16.mxu1 %v1551_v10 }
 0x22e   : > { %1022 = vmatpush1.bf16.msra.mxu1 %v1549_v9 }
 0x22f   : > { %1023 = vmatprep.subr.bf16.mxu1 %v1554_v11 }
 0x232   : > { %1024 = vmatpush1.bf16.msra.mxu1 %v1552_v12 }
 0x233   : > { %1025 = vmatprep.subr.bf16.mxu1 %v1557_v13 }
 0x236   : > { %1026 = vmatpush1.bf16.msra.mxu1 %v1555_v15 }
 0x237   : > { %1149 = vmatprep.subr.bf16.mxu1 %v1560_v16 }
 0x2d5   : > { %v818_v18 = vpop.f32.mrf.mxu1 }
 0x2d6   : > { %v819_v19 = vadd.f32 %v818_v18, %v746_v17 }
 0x2d7   : > { %v1402_v20 = vpop.f32.mrf.mxu1 }
 0x2d8   : > { %v1352_v21 = vmul.f32 -1.442695, %v819_v19 }
 0x2d9   : > { %v904_v22 = vpop.f32.mrf.mxu1 }
 0x2da   : > { %1582 = vpow2.f32 %v1352_v21  ;;  %v905_v27 = vadd.f32 %v904_v22, %v833_v25 }
 0x2db   : > { %v1407_v23 = vpop.f32.mrf.mxu1 }
 0x2dc   : > { %v1354_v28 = vmul.f32 -1.442695, %v905_v27 }
 0x2e7   : > { %v1583_v24 = vpop.eup %1582 }
 0x2e8   : > { %v825_v26 = vadd.f32 1.0, %v1583_v24 }
 0x2ea   : > { %1584 = vrcp.f32 %v825_v26 }
 0x2eb   : > { %1586 = vpow2.f32 %v1354_v28 }
 0x2f7   : > { %v1585_v29 = vpop.eup %1584 }
 0x2f8   : > { %v914_v31 = vpack.c.bf16 %v1585_v29, %v1585_v29  ;;  %v1587_v35 = vpop.eup %1586 }
 0x2f9   : > { %v911_v39 = vadd.f32 1.0, %v1587_v35 }
 0x2fa   : > { %1044 = vmatmul.mubr.bf16.vlgmr.msra.gmra.mxu1 %v914_v31 }
 0x2fb   : > { %1150 = vmatpush1.bf16.msra.mxu1 %v1558_v30  ;;  %1181 = vmatprep.mubr.bf16.mxu1 %v1744_v38  ;;  %1588 = vrcp.f32 %v911_v39  ;;  %v1578_v38 = vld [vmem:[#allocation7 + $0x14] ss:$8 sps:$4 sm:$0xff]  }
 0x2fc   : > { %1151 = vmatprep.subr.bf16.mxu1 %v1563_v32 }
 0x2ff   : > { %1152 = vmatpush1.bf16.msra.mxu1 %v1561_v33 }
 0x300   : > { %1153 = vmatprep.subr.bf16.mxu1 %v1566_v34 }
 0x303   : > { %1154 = vmatpush1.bf16.msra.mxu1 %v1564_v36 }
 0x304   : > { %1155 = vmatprep.subr.bf16.mxu1 %v1569_v37 }
 0x307   : > { %1156 = vmatpush1.bf16.msra.mxu1 %v1567_v40 }
 0x308   : > { %1157 = vmatprep.subr.bf16.mxu1 %v1572_v41  ;;  %v1589_v47 = vpop.eup %1588 }
 0x309   : > { %v1052_v49 = vpack.c.bf16 %v1589_v47, %v1589_v47 }
 0x30b   : > { %1158 = vmatpush1.bf16.msra.mxu1 %v1570_v42 }
 0x30c   : > { %1159 = vmatprep.subr.bf16.mxu1 %v1575_v43 }
 0x30f   : > { %1160 = vmatpush1.bf16.msra.mxu1 %v1573_v44 }
 0x310   : > { %1161 = vmatprep.subr.bf16.mxu1 %v1578_v38 }
 0x313   : > { %1162 = vmatpush1.bf16.msra.mxu1 %v1576_v45 }
 0x314   : > { %1163 = vmatprep.subr.bf16.mxu1 %v1581_v46 }
 0x317   : > { %1164 = vmatpush1.bf16.msra.mxu1 %v1579_v48 }
 0x31a   : > { %1182 = vmatmul.mubr.bf16.vlgmr.msra.gmra.mxu1 %v1052_v49 }
 0x3ba   : > { %v1045_v50 = vpop.f32.mrf.mxu1 }
 0x3bc   : > { %v1047_v51 = vpop.f32.mrf.mxu1 }
 0x3be   : > { %v1049_v52 = vpop.f32.mrf.mxu1 }
 0x3c0   : > { %v1050_v53 = vpop.f32.mrf.mxu1 }
 0x3da   : > { %v1183_v54 = vpop.f32.mrf.mxu1 }
 0x3db   : > { %v1190_v56 = vmul.f32 %v1183_v54, %v1045_v50 }
 0x3dc   : > { %v1185_v55 = vpop.f32.mrf.mxu1 }
 0x3dd   : > { %v1191_v57 = vmul.f32 %v1185_v55, %v1047_v51 }
 0x3de   : > { %v1187_v58 = vpop.f32.mrf.mxu1 }
 0x3df   : > { %v1194_v59 = vcombine.low %v1190_v56, %v1191_v57 }
 0x3e0   : > { %v1188_v60 = vpop.f32.mrf.mxu1 }
 0x3e1   : > { %v1196_v61 = vmul.f32 %v1194_v59, %v1904_v14 }
 0x3e3   : > { %1197 = vst [vmem:[%s396_s18] sm:$0xff] %v1196_v61 }
 0x3e4   : > { %1681 = shalt.err (!%p1678_p0)
}
 0x3e5   : > { %s1682_s21 = scalar_lea.hbm %s1211_s22, 128  ;;  %s1686_s18 = scalar_lea.hbm %s1979_s10, 256 }
 0x3e6   : > { %p1683_p6 = scmp.ne.s32.totalorder %s1211_s22, %s1682_s21  ;;  %p1687_p1 = scmp.lt.s32.totalorder %s1211_s22, %s1979_s10 }
 0x3e7   : > { %p1688_p5 = scmp.lt.s32.totalorder %s1686_s18, %s1682_s21 }
 0x3e8   : > { %p1684_p9 = pnand %p1683_p6, %p1991_p3 }
 0x3e9   : > { %p1689_p10 = por %p1688_p5, %p1687_p1 }
 0x3ea   : > { %p1685_p13 = pneg %p1684_p9 }
 0x3ec   : > { %p1690_p12 = pnand %p1689_p10, %p1685_p13 }
 0x3ee   : > { %1693 = shalt.err (!%p1690_p12)
}
 0x3ef   : > { %1420 = dma.vmem_to_hbm [thread:$0]  (%p1991_p3), %s1214_s27, 128, %s1211_s22, %s1199_s25  }
 0x3f0 PF: > { %p1442_p2 = scmp.ge.s32.totalorder %s1736_s16, 2  ;;  %s1225_s28 = sand.u32 1, %s1724_s13  }
 0x3f1   : > { %p1992_p4 = scmp.ne.s32.totalorder %s1984_s24, 0  ;;  %s1226_s30 = scalar_lea.sflag [#allocation4], %s1225_s28 }
 0x3f3   : > { %p1433_p7 = pnand %p1442_p2, %p1992_p4 }
 0x3f5   : > { %p1434_p8 = pneg %p1433_p7 }
 0x3f7   : > { %1719 = dma.done.wait (%p1434_p8), %s1226_s30, 128  }
 0x3f8   : > { %1721 = vsyncadd (%p1434_p8), %s1226_s30, 4294967168  ;;  %s1993_s17 = sld [smem:[#allocation12_spill]]  ;;  %p22_p11 = scmp.ge.s32.totalorder %s1827_s19, 4  }
 0x3f9   : > { %s1994_s13 = smov %s1728_s14  ;;  %s1995_s14 = smov %s1732_s15 }
 0x3fa   : > { %s1997_s16 = smov %s1827_s19  ;;  %24 = sbr.rel (!%p22_p11) target bundleno = 5 (0x5), region = 108 }
 0x3fe   : > { %s1996_s15 = smov %s1993_s17 }
 0x3ff   :  { %1231 = vsyncpa [#allocation3], 1 }
 0x400   :  { %1233 = vsyncpa [#allocation3 + $0x1], 1 }
 0x401   :  { %1234 = vsyncpa [#allocation6], 1 }
 0x402   :  { %1235 = vsyncpa [#allocation4], 1 }
 0x403   :  { %1237 = vsyncpa [#allocation4 + $0x1], 1 }

</bundles_post_ra>
